<compile_context>
chip_gen: v7x
topology: tpu7x:2x2x1
jax: 0.10.0
libtpu: 0.0.40
codegen_flags: <defaults>
</compile_context>

<pallas_src>
import functools
import math

import jax
import jax.numpy as jnp
from jax.experimental import pallas as pl
from jax.experimental.pallas import tpu as pltpu


_TILE_BUDGET = 4 << 20  # target f32 bytes per pipelined tile


def _sru_stats_kernel(xg_ref, mean_ref, inv_ref, *, n_elems, eps):
    """Accumulate per-(batch, group) sum / sumsq; finalize to mean & 1/(std+eps)."""
    t = pl.program_id(1)
    xg = xg_ref[0].astype(jnp.float32)               # (G, Tg)
    s1 = jnp.sum(xg, axis=-1, keepdims=True)         # (G, 1)  XLU lane reduce
    s2 = jnp.sum(xg * xg, axis=-1, keepdims=True)    # (G, 1)

    @pl.when(t == 0)
    def _init():
        mean_ref[0] = s1
        inv_ref[0] = s2

    @pl.when(t > 0)
    def _accumulate():
        mean_ref[0] += s1
        inv_ref[0] += s2

    @pl.when(t == pl.num_programs(1) - 1)
    def _finalize():
        tot = mean_ref[0]                            # sum(x)   per group
        tot2 = inv_ref[0]                            # sum(x^2) per group
        mean = tot / n_elems
        var = (tot2 - tot * mean) / (n_elems - 1.0)  # unbiased (torch.std default)
        std = jnp.sqrt(jnp.maximum(var, 0.0))
        mean_ref[0] = mean
        inv_ref[0] = 1.0 / (std + eps)               # exact; reused as a multiply


def _sru_apply_kernel(x_ref, scale_ref, shift_ref, wg_ref, o_ref, *, half, thresh):
    """Fused normalize+affine (pre-folded scale/shift), gate, half-swap reconstruct."""
    x = x_ref[0].astype(jnp.float32)                 # (C, T)
    scale = scale_ref[0]                             # (C, 1)  = w / (std + eps)
    shift = shift_ref[0]                             # (C, 1)  = b - mean * scale
    wg = wg_ref[...]                                 # (C, 1)  = w / sum(w)

    gn = x * scale + shift                           # GroupBatchnorm2d + affine
    # sigmoid(gn * wg) >= gate_threshold  <=>  gn * wg >= logit(gate_threshold)
    mask = (gn * wg) >= thresh
    x1 = jnp.where(mask, gn, 0.0)                    # informative part
    x2 = gn - x1                                     # non-informative part (== where(~mask, gn, 0))

    # reconstruct: out[:half] = x1[:half] + x2[half:] ; out[half:] = x1[half:] + x2[:half]
    # written straight to the output ref (no concatenated temp buffer).
    o_ref[0, :half, :] = (x1[:half, :] + x2[half:, :]).astype(o_ref.dtype)
    o_ref[0, half:, :] = (x1[half:, :] + x2[:half, :]).astype(o_ref.dtype)


def _pick_lane_tile(total, rows, want=None):
    """Lane-axis tile: `total` itself, or a multiple of 128 that divides `total`."""
    if want is not None and (want == total or (total % want == 0 and want % 128 == 0)):
        return int(want)
    cap = max(128, (_TILE_BUDGET // (rows * 4)) // 128 * 128)
    if total <= cap:
        return int(total)
    for t in range(int(min(cap, total)), 127, -128):
        if total % t == 0:
            return int(t)
    return int(total)                                 # no 128-divisor: one full slab


def _vmem_limit(rows, lanes):
    tile = rows * lanes * 4                           # f32 working size per tile
    return int(min(max(8 * tile + (2 << 20), 16 << 20), 40 << 20))


def sru_forward(x_nchw, weight, bias, *, group_num, eps=1e-10, gate_treshold=0.5,
                tile_hw=None):
    N, C, H, W = x_nchw.shape
    G = int(group_num)
    assert C % G == 0 and C >= G, "channels must split evenly into groups"
    assert C % 2 == 0, "SRU reconstruct splits channels into two halves"
    HW = H * W
    cg = C // G
    dtype = x_nchw.dtype

    # Free (metadata-only) views; params as (C, 1) columns.
    x_c = x_nchw.reshape(N, C, HW)                   # channel-major view (pass 2)
    x_g = x_nchw.reshape(N, G, cg * HW)              # group-major view   (pass 1)
    w2 = weight.reshape(C, 1).astype(jnp.float32)
    b2 = bias.reshape(C, 1).astype(jnp.float32)

    # Gate threshold moved to logit space (sigmoid is monotonic, so exact).
    if gate_treshold <= 0.0:
        thresh = -float("inf")
    elif gate_treshold >= 1.0:
        thresh = float("inf")
    else:
        thresh = math.log(gate_treshold / (1.0 - gate_treshold))

    # ---------------- pass 1: per-(batch, group) mean and 1/(std+eps) -------------
    tg = _pick_lane_tile(cg * HW, G, want=None if tile_hw is None else cg * tile_hw)
    n_tiles_g = (cg * HW) // tg
    stats_kernel = functools.partial(_sru_stats_kernel,
                                     n_elems=float(cg * HW), eps=float(eps))
    mean_g, inv_g = pl.pallas_call(
        stats_kernel,
        out_shape=(jax.ShapeDtypeStruct((N, G, 1), jnp.float32),
                   jax.ShapeDtypeStruct((N, G, 1), jnp.float32)),
        grid_spec=pltpu.PrefetchScalarGridSpec(
            num_scalar_prefetch=0,
            grid=(N, n_tiles_g),
            in_specs=[pl.BlockSpec((1, G, tg), lambda n, t: (n, 0, t))],
            out_specs=(pl.BlockSpec((1, G, 1), lambda n, t: (n, 0, 0)),
                       pl.BlockSpec((1, G, 1), lambda n, t: (n, 0, 0))),
        ),
        compiler_params=pltpu.CompilerParams(
            dimension_semantics=("parallel", "arbitrary"),
            vmem_limit_bytes=_vmem_limit(G, tg)),
    )(x_g)

    # Tiny XLA glue (O(N*C) scalars): broadcast group stats to per-channel and
    # pre-fold the whole affine so pass 2 is a single FMA per element.
    mean_c = jnp.broadcast_to(mean_g[:, :, None, :], (N, G, cg, 1)).reshape(N, C, 1)
    inv_c = jnp.broadcast_to(inv_g[:, :, None, :], (N, G, cg, 1)).reshape(N, C, 1)
    scale_c = inv_c * w2                              # (N, C, 1) = w / (std + eps)
    shift_c = b2 - mean_c * scale_c                   # (N, C, 1)
    wg = w2 / jnp.sum(w2)                             # (C, 1)    w_gamma (computed once)

    # ---------------- pass 2: normalize + affine + gate + reconstruct -------------
    t_hw = _pick_lane_tile(HW, C, want=tile_hw)
    n_tiles = HW // t_hw
    apply_kernel = functools.partial(_sru_apply_kernel,
                                     half=C // 2, thresh=float(thresh))
    out = pl.pallas_call(
        apply_kernel,
        out_shape=jax.ShapeDtypeStruct((N, C, HW), dtype),
        grid_spec=pltpu.PrefetchScalarGridSpec(
            num_scalar_prefetch=0,
            grid=(N, n_tiles),
            in_specs=[
                pl.BlockSpec((1, C, t_hw), lambda n, t: (n, 0, t)),  # x tile
                pl.BlockSpec((1, C, 1), lambda n, t: (n, 0, 0)),     # scale (resident per n)
                pl.BlockSpec((1, C, 1), lambda n, t: (n, 0, 0)),     # shift (resident per n)
                pl.BlockSpec((C, 1), lambda n, t: (0, 0)),           # w_gamma (resident)
            ],
            out_specs=pl.BlockSpec((1, C, t_hw), lambda n, t: (n, 0, t)),
        ),
        compiler_params=pltpu.CompilerParams(
            dimension_semantics=("parallel", "parallel"),
            vmem_limit_bytes=_vmem_limit(C, t_hw)),
    )(x_c, scale_c, shift_c, wg)

    return out.reshape(N, C, H, W)


def sru_reference(x_nchw, weight, bias, *, group_num, eps=1e-10, gate_treshold=0.5):
    """Pure-JAX reference mirroring the PyTorch module (for verification)."""
    N, C, H, W = x_nchw.shape
    x = x_nchw.astype(jnp.float32)
    xg = x.reshape(N, group_num, -1)
    mean = xg.mean(axis=2, keepdims=True)
    std = jnp.sqrt(xg.var(axis=2, keepdims=True, ddof=1))
    xn = ((xg - mean) / (std + eps)).reshape(N, C, H, W)
    w = weight.reshape(1, C, 1, 1).astype(jnp.float32)
    b = bias.reshape(1, C, 1, 1).astype(jnp.float32)
    gn_x = xn * w + b
    w_gamma = w / jnp.sum(w)
    rew = jax.nn.sigmoid(gn_x * w_gamma)
    info = rew >= gate_treshold
    x_1 = jnp.where(info, gn_x, 0.0)
    x_2 = jnp.where(info, 0.0, gn_x)
    half = C // 2
    return jnp.concatenate(
        [x_1[:, :half] + x_2[:, half:], x_1[:, half:] + x_2[:, :half]], axis=1)


if __name__ == "__main__":
    key = jax.random.PRNGKey(0)
    k1, k2, k3, k4 = jax.random.split(key, 4)

    # Test 1: tiny shape consistent with the module (oup_channels=4, group_num=2).
    N, C, H, W, G = 2, 4, 16, 16, 2
    x = jax.random.normal(k1, (N, C, H, W), dtype=jnp.float32)
    weight = jax.random.normal(k2, (C, 1, 1), dtype=jnp.float32)   # randn init
    bias = jnp.zeros((C, 1, 1), dtype=jnp.float32)                 # zeros init
    out = jax.block_until_ready(sru_forward(x, weight, bias, group_num=G))
    ref = sru_reference(x, weight, bias, group_num=G)
    assert out.shape == (N, C, H, W)
    assert jnp.allclose(out, ref, atol=1e-4, rtol=1e-4), "test1 mismatch vs reference"

    # Test 2: default group_num=16 with multiple HW tiles -- exercises the tiled
    # two-pass path (stats accumulated across 4 tiles, aligned (32, 256) blocks).
    N, C, H, W, G = 2, 32, 32, 32, 16
    x = jax.random.normal(k3, (N, C, H, W), dtype=jnp.float32)
    weight = jax.random.normal(k4, (C, 1, 1), dtype=jnp.float32)
    bias = 0.1 * jax.random.normal(k1, (C, 1, 1), dtype=jnp.float32)
    out = jax.block_until_ready(
        sru_forward(x, weight, bias, group_num=G, tile_hw=256))
    ref = sru_reference(x, weight, bias, group_num=G)
    assert out.shape == (N, C, H, W)
    assert jnp.allclose(out, ref, atol=1e-4, rtol=1e-4), "test2 mismatch vs reference"

    print("KERNEL_OK")
</pallas_src>

<mosaic_0001>
module attributes {stable_mosaic.version = 11 : i64} {
  func.func @_sru_stats_kernel(%arg0: i32, %arg1: i32, %arg2: memref<1x2x512xf32, #tpu.memory_space<vmem>>, %arg3: memref<1x2x1xf32, #tpu.memory_space<vmem>>, %arg4: memref<1x2x1xf32, #tpu.memory_space<vmem>>) attributes {dimension_semantics = [#tpu.dimension_semantics<parallel>, #tpu.dimension_semantics<arbitrary>], iteration_bounds = array<i64: 2, 1>, scalar_prefetch = 0 : i64, scratch_operands = 0 : i64, tpu.core_type = #tpu.core_type<tc>, window_params = [{transform_indices = @transform_0, window_bounds = array<i64: 1, 2, 512>}, {transform_indices = @transform_1, window_bounds = array<i64: 1, 2, 1>}, {transform_indices = @transform_2, window_bounds = array<i64: 1, 2, 1>}]} {
    %c0 = arith.constant 0 : index
    %c0_0 = arith.constant 0 : index
    %c0_1 = arith.constant 0 : index
    %0 = vector.load %arg2[%c0, %c0_0, %c0_1] : memref<1x2x512xf32, #tpu.memory_space<vmem>>, vector<1x2x512xf32>
    %1 = vector.shape_cast %0 : vector<1x2x512xf32> to vector<2x512xf32>
    %cst = arith.constant dense<0.000000e+00> : vector<2xf32>
    %2 = vector.multi_reduction <add>, %1, %cst [1] : vector<2x512xf32> to vector<2xf32>
    %3 = vector.shape_cast %2 : vector<2xf32> to vector<2x1xf32>
    %4 = arith.mulf %1, %1 : vector<2x512xf32>
    %cst_2 = arith.constant dense<0.000000e+00> : vector<2xf32>
    %5 = vector.multi_reduction <add>, %4, %cst_2 [1] : vector<2x512xf32> to vector<2xf32>
    %6 = vector.shape_cast %5 : vector<2xf32> to vector<2x1xf32>
    %c0_i32 = arith.constant 0 : i32
    %7 = arith.cmpi eq, %arg1, %c0_i32 : i32
    %8 = arith.extui %7 : i1 to i32
    %c0_i32_3 = arith.constant 0 : i32
    %9 = arith.cmpi ne, %8, %c0_i32_3 : i32
    scf.if %9 {
      %c0_8 = arith.constant 0 : index
      %c0_9 = arith.constant 0 : index
      %c0_10 = arith.constant 0 : index
      %16 = vector.load %arg3[%c0_8, %c0_9, %c0_10] : memref<1x2x1xf32, #tpu.memory_space<vmem>>, vector<1x2x1xf32>
      %17 = vector.shape_cast %16 : vector<1x2x1xf32> to vector<2x1xf32>
      %18 = vector.shape_cast %3 : vector<2x1xf32> to vector<1x2x1xf32>
      tpu.vector_store %arg3[%c0_8, %c0_9, %c0_10], %18 {strides = array<i32>} : memref<1x2x1xf32, #tpu.memory_space<vmem>>, vector<1x2x1xf32>,
      %c0_11 = arith.constant 0 : index
      %c0_12 = arith.constant 0 : index
      %c0_13 = arith.constant 0 : index
      %19 = vector.load %arg4[%c0_11, %c0_12, %c0_13] : memref<1x2x1xf32, #tpu.memory_space<vmem>>, vector<1x2x1xf32>
      %20 = vector.shape_cast %19 : vector<1x2x1xf32> to vector<2x1xf32>
      %21 = vector.shape_cast %6 : vector<2x1xf32> to vector<1x2x1xf32>
      tpu.vector_store %arg4[%c0_11, %c0_12, %c0_13], %21 {strides = array<i32>} : memref<1x2x1xf32, #tpu.memory_space<vmem>>, vector<1x2x1xf32>,
    } else {
    }
    %c0_i32_4 = arith.constant 0 : i32
    %10 = arith.cmpi sgt, %arg1, %c0_i32_4 : i32
    %11 = arith.extui %10 : i1 to i32
    %c0_i32_5 = arith.constant 0 : i32
    %12 = arith.cmpi ne, %11, %c0_i32_5 : i32
    scf.if %12 {
      %c0_8 = arith.constant 0 : index
      %c0_9 = arith.constant 0 : index
      %c0_10 = arith.constant 0 : index
      %16 = vector.load %arg3[%c0_8, %c0_9, %c0_10] : memref<1x2x1xf32, #tpu.memory_space<vmem>>, vector<1x2x1xf32>
      %17 = vector.shape_cast %16 : vector<1x2x1xf32> to vector<2x1xf32>
      %18 = arith.addf %17, %3 : vector<2x1xf32>
      %c0_11 = arith.constant 0 : index
      %c0_12 = arith.constant 0 : index
      %c0_13 = arith.constant 0 : index
      %19 = vector.load %arg3[%c0_11, %c0_12, %c0_13] : memref<1x2x1xf32, #tpu.memory_space<vmem>>, vector<1x2x1xf32>
      %20 = vector.shape_cast %19 : vector<1x2x1xf32> to vector<2x1xf32>
      %21 = vector.shape_cast %18 : vector<2x1xf32> to vector<1x2x1xf32>
      tpu.vector_store %arg3[%c0_11, %c0_12, %c0_13], %21 {strides = array<i32>} : memref<1x2x1xf32, #tpu.memory_space<vmem>>, vector<1x2x1xf32>,
      %c0_14 = arith.constant 0 : index
      %c0_15 = arith.constant 0 : index
      %c0_16 = arith.constant 0 : index
      %22 = vector.load %arg4[%c0_14, %c0_15, %c0_16] : memref<1x2x1xf32, #tpu.memory_space<vmem>>, vector<1x2x1xf32>
      %23 = vector.shape_cast %22 : vector<1x2x1xf32> to vector<2x1xf32>
      %24 = arith.addf %23, %6 : vector<2x1xf32>
      %c0_17 = arith.constant 0 : index
      %c0_18 = arith.constant 0 : index
      %c0_19 = arith.constant 0 : index
      %25 = vector.load %arg4[%c0_17, %c0_18, %c0_19] : memref<1x2x1xf32, #tpu.memory_space<vmem>>, vector<1x2x1xf32>
      %26 = vector.shape_cast %25 : vector<1x2x1xf32> to vector<2x1xf32>
      %27 = vector.shape_cast %24 : vector<2x1xf32> to vector<1x2x1xf32>
      tpu.vector_store %arg4[%c0_17, %c0_18, %c0_19], %27 {strides = array<i32>} : memref<1x2x1xf32, #tpu.memory_space<vmem>>, vector<1x2x1xf32>,
    } else {
    }
    %c0_i32_6 = arith.constant 0 : i32
    %13 = arith.cmpi eq, %arg1, %c0_i32_6 : i32
    %14 = arith.extui %13 : i1 to i32
    %c0_i32_7 = arith.constant 0 : i32
    %15 = arith.cmpi ne, %14, %c0_i32_7 : i32
    scf.if %15 {
      %c0_8 = arith.constant 0 : index
      %c0_9 = arith.constant 0 : index
      %c0_10 = arith.constant 0 : index
      %16 = vector.load %arg3[%c0_8, %c0_9, %c0_10] : memref<1x2x1xf32, #tpu.memory_space<vmem>>, vector<1x2x1xf32>
      %17 = vector.shape_cast %16 : vector<1x2x1xf32> to vector<2x1xf32>
      %c0_11 = arith.constant 0 : index
      %c0_12 = arith.constant 0 : index
      %c0_13 = arith.constant 0 : index
      %18 = vector.load %arg4[%c0_11, %c0_12, %c0_13] : memref<1x2x1xf32, #tpu.memory_space<vmem>>, vector<1x2x1xf32>
      %19 = vector.shape_cast %18 : vector<1x2x1xf32> to vector<2x1xf32>
      %cst_14 = arith.constant 5.120000e+02 : f32
      %20 = vector.broadcast %cst_14 : f32 to vector<2x1xf32>
      %21 = arith.divf %17, %20 : vector<2x1xf32>
      %22 = arith.mulf %17, %21 : vector<2x1xf32>
      %23 = arith.subf %19, %22 : vector<2x1xf32>
      %cst_15 = arith.constant 5.110000e+02 : f32
      %24 = vector.broadcast %cst_15 : f32 to vector<2x1xf32>
      %25 = arith.divf %23, %24 : vector<2x1xf32>
      %cst_16 = arith.constant 0.000000e+00 : f32
      %26 = vector.broadcast %cst_16 : f32 to vector<2x1xf32>
      %27 = arith.maximumf %25, %26 : vector<2x1xf32>
      %28 = math.sqrt %27 : vector<2x1xf32>
      %c0_17 = arith.constant 0 : index
      %c0_18 = arith.constant 0 : index
      %c0_19 = arith.constant 0 : index
      %29 = vector.load %arg3[%c0_17, %c0_18, %c0_19] : memref<1x2x1xf32, #tpu.memory_space<vmem>>, vector<1x2x1xf32>
      %30 = vector.shape_cast %29 : vector<1x2x1xf32> to vector<2x1xf32>
      %31 = vector.shape_cast %21 : vector<2x1xf32> to vector<1x2x1xf32>
      tpu.vector_store %arg3[%c0_17, %c0_18, %c0_19], %31 {strides = array<i32>} : memref<1x2x1xf32, #tpu.memory_space<vmem>>, vector<1x2x1xf32>,
      %cst_20 = arith.constant 1.000000e-10 : f32
      %32 = vector.broadcast %cst_20 : f32 to vector<2x1xf32>
      %33 = arith.addf %28, %32 : vector<2x1xf32>
      %cst_21 = arith.constant 1.000000e+00 : f32
      %34 = vector.broadcast %cst_21 : f32 to vector<2x1xf32>
      %35 = arith.divf %34, %33 : vector<2x1xf32>
      %c0_22 = arith.constant 0 : index
      %c0_23 = arith.constant 0 : index
      %c0_24 = arith.constant 0 : index
      %36 = vector.load %arg4[%c0_22, %c0_23, %c0_24] : memref<1x2x1xf32, #tpu.memory_space<vmem>>, vector<1x2x1xf32>
      %37 = vector.shape_cast %36 : vector<1x2x1xf32> to vector<2x1xf32>
      %38 = vector.shape_cast %35 : vector<2x1xf32> to vector<1x2x1xf32>
      tpu.vector_store %arg4[%c0_22, %c0_23, %c0_24], %38 {strides = array<i32>} : memref<1x2x1xf32, #tpu.memory_space<vmem>>, vector<1x2x1xf32>,
    } else {
    }
    return
  }
  func.func @transform_0(%arg0: i32, %arg1: i32) -> (i32, i32, i32) {
    %c0_i32 = arith.constant 0 : i32
    %c0_i32_0 = arith.constant 0 : i32
    return %arg0, %c0_i32, %arg1 : i32, i32, i32
  }
  func.func @transform_1(%arg0: i32, %arg1: i32) -> (i32, i32, i32) {
    %c0_i32 = arith.constant 0 : i32
    %c0_i32_0 = arith.constant 0 : i32
    %c0_i32_1 = arith.constant 0 : i32
    return %arg0, %c0_i32, %c0_i32_0 : i32, i32, i32
  }
  func.func @transform_2(%arg0: i32, %arg1: i32) -> (i32, i32, i32) {
    %c0_i32 = arith.constant 0 : i32
    %c0_i32_0 = arith.constant 0 : i32
    %c0_i32_1 = arith.constant 0 : i32
    return %arg0, %c0_i32, %c0_i32_0 : i32, i32, i32
  }
}

</mosaic_0001>

<bundles_post_ra>
// kernel: tpu_custom_call.1
= control target key start
LH: loop header
LB: loop body
LE: loop exit
PB: predicated region body
PF: predicated region fallthrough
CT: control target
= control target key end

     0   :  { %8 = vsyncpa [#allocation3], 0  ;;  %s717_s0 = inlined_call_operand.hbm [shape: f32[2,2,512], index: 0, kind: input, shape index: {}]   ;;  %s718_s1 = inlined_call_operand.vmem [shape: f32[2,2,1], index: 1, kind: output, shape index: {0}]   ;;  %s719_s2 = inlined_call_operand.vmem [shape: f32[2,2,1], index: 2, kind: output, shape index: {1}]  }
   0x1   :  { %10 = vsyncpa [#allocation3 + $0x1], 0  ;;  %s577_s9 = smov 0   ;;  %s579_s10 = smov 0  }
   0x2   :  { %s581_s11 = smov 0   ;;  %s583_s12 = smov 0  }
   0x3   :  { %s585_s13 = smov 0   ;;  %s587_s14 = smov 0  }
   0x4 LB: > { %s403_s15 = sadd.s32 4294967295, %s558_s14   ;;  %s28_s16 = sadd.s32 1, %s554_s13  ;;  %s558_s14 = sphi %s587_s14, %s16_s14   ;;  %s554_s13 = sphi %s585_s13, %s729_s13   ;;  %s550_s12 = sphi %s583_s12, %s728_s12   ;;  %s546_s11 = sphi %s581_s11, %s727_s11   ;;  %s542_s10 = sphi %s579_s10, %s726_s10   ;;  %s538_s9 = sphi %s577_s9, %s725_s9  }
   0x5   : > { %p30_p0 = scmp.ge.s32.totalorder %s28_s16, 2  ;;  %s37_s17 = sadd.s32 1, %s546_s11 }
   0x6   : > { %p44_p1 = scmp.ne.s32.totalorder %s546_s11, %s542_s10  ;;  %p45_p2 = scmp.eq.s32.totalorder %s558_s14, 0 }
   0x7   : > { %s731_s16 = smov (%p30_p0, %s28_s16), 0  ;;  %p50_p4 = scmp.ne.s32.totalorder %s542_s10, %s538_s9 }
   0x8   : > { %p613_p3 = por %p45_p2, %p44_p1  ;;  %s32_s19 = ssub.s32 %s554_s13, %s731_s16 }
   0x9   : > { %p51_p5 = scmp.eq.s32.totalorder %s403_s15, 0  ;;  %p35_p6 = scmp.eq.s32.totalorder %s32_s19, 0 }
   0xa   : > { %p423_p8 = scmp.lt.s32.totalorder %s558_s14, 2  ;;  %s126_s22 = sand.u32 1, %s546_s11  }
   0xb   : > { %p620_p7 = por %p51_p5, %p50_p4  ;;  %s416_s23 = sshll.u32 %s554_s13, 7 }
   0xc   : > { %s626_s21 = scalar_select %p35_p6, %s546_s11, %s37_s17  }
   0xd   : > { %s407_s24 = sshll.u32 %s126_s22, 3  ;;  %s633_s27 = scalar_lea.hbm %s717_s0, %s416_s23 }
   0xe   : > { %s130_s28 = scalar_lea.vmem [#allocation2], %s407_s24  ;;  %p637_p9 = pnand %p423_p8, %p613_p3 }
   0xf   : > { %s140_s29 = sshll.u32 %s130_s28, 4  ;;  %s127_s3 = scalar_lea.sflag [#allocation3], %s126_s22  ;;  %s641_s29 = int_to_ptr.vmem [resolvable:$true] %s140_s29 }
  0x10   : > { %s478_s4 = scalar_lea.hbm %s633_s27, 128  ;;  %p480_p13 = pneg %p637_p9 }
  0x11   : > { %p479_p12 = scmp.ne.s32.totalorder %s633_s27, %s478_s4  ;;  %s483_s7 = scalar_lea.hbm %s717_s0, 256 }
  0x12   : > { %p484_p2 = scmp.lt.u32.totalorder %s633_s27, %s717_s0  ;;  %p485_p3 = scmp.lt.u32.totalorder %s483_s7, %s478_s4 }
  0x13   : > { %p481_p0 = pnand %p480_p13, %p479_p12  ;;  %p487_p5 = scmp.lt.u32.totalorder %s478_s4, %s633_s27 }
  0x14   : > { %p486_p4 = por %p485_p3, %p484_p2 }
  0x15   : > { %p482_p1 = pneg %p481_p0 }
  0x16   : > { %p488_p6 = por %p487_p5, %p486_p4 }
  0x18   : > { %p489_p8 = pnand %p488_p6, %p482_p1 }
  0x1a   : > { %492 = shalt.err (!%p489_p8)
}
  0x1b   : > { %s493_s15 = scalar_lea.vmem %s641_s29, 128  ;;  %s560_s17 = smov [#allocation2]  }
  0x1c   : > { %p494_p12 = scmp.ne.s32.totalorder %s641_s29, %s493_s15  ;;  %s498_s18 = sshll.u32 %s560_s17, 4  ;;  %s499_s18 = int_to_ptr.vmem [resolvable:$false] %s498_s18 }
  0x1d   : > { %s500_s19 = scalar_lea.vmem %s499_s18, 256  ;;  %p501_p11 = scmp.lt.s32.totalorder %s641_s29, %s499_s18 }
  0x1e   : > { %p496_p0 = pnand %p494_p12, %p480_p13  ;;  %p502_p2 = scmp.lt.s32.totalorder %s500_s19, %s493_s15 }
  0x20   : > { %p497_p10 = pneg %p496_p0  ;;  %p503_p3 = por %p502_p2, %p501_p11 }
  0x22   : > { %p504_p4 = pnand %p503_p3, %p497_p10 }
  0x24   : > { %507 = shalt.err (!%p504_p4)
}
  0x25   : > { %422 = dma.hbm_to_vmem [thread:$0]  (!%p637_p9), %s633_s27, 128, %s641_s29, %s127_s3  }
  0x26   : > { %p723_p1 = scmp.lt.s32.totalorder %s558_s14, 3  ;;  %p724_p5 = scmp.ge.s32.totalorder %s558_s14, 1 }
  0x28   : > { %p146_p13 = pnand %p724_p5, %p723_p1 }
  0x29   : > { %s151_s22 = sand.u32 (!%p146_p13), 1, %s542_s10  }
  0x2a   : > { %149 = sbr.rel (%p146_p13) target bundleno = 257 (0x101), region = 24  ;;  %s411_s23 = sshll.u32 (!%p146_p13), %s151_s22, 3 }
  0x2b   : > { %s152_s24 = scalar_lea.sflag (!%p146_p13), [#allocation3], %s151_s22  ;;  %s155_s25 = scalar_lea.vmem (!%p146_p13), [#allocation2], %s411_s23 }
  0x31   : > { %533 = dma.done.wait (%p620_p7), %s152_s24, 128  }
  0x32   : > { %535 = vsyncadd (%p620_p7), %s152_s24, 4294967168  ;;  %v194_v0 = vlaneseq  ;;  %v561_v1 = vmov 1983009808   ;;  %v188_v6 = vld [vmem:[%s155_s25] sm:$0xff]  ;;  %vm211_vm0 = vcmask 1041408   ;;  %p180_p7 = scmp.lt.s32.totalorder %s550_s12, 1 }
  0x33   : > { %v192_v2 = vunpack.c.l.s4 %v561_v1  ;;  %v190_v7 = vcombine.high %v188_v6, %v188_v6  ;;  %v221_v9 = vmul.f32 %v188_v6, %v188_v6  ;;  %vm257_vm1 = vcmask 1024  }
  0x34   : > { %v195_v3 = vshrl.u32 %v194_v0, 7  ;;  %s733_s12 = smov (!%p180_p7, %s550_s12), 1 }
  0x35   : > { %v193_v4 = vunpack.c.0.s8 %v192_v2  ;;  %v223_v13 = vcombine.high %v221_v9, %v221_v9  ;;  %s412_s20 = sshll.u32 %s733_s12, 1 }
  0x36   : > { %s183_s28 = scalar_lea.vmem %s718_s1, %s412_s20  ;;  %s187_s3 = scalar_lea.vmem %s719_s2, %s412_s20 }
  0x37   : > { %v196_v5 = vsub.s32 %v193_v4, %v195_v3 }
  0x39   : > { %v197_v8 = vrot.slane %v188_v6, %v196_v5  ;;  %v204_v10 = vrot.slane %v190_v7, %v196_v5  ;;  %v230_v14 = vrot.slane %v221_v9, %v196_v5  ;;  %v237_v18 = vrot.slane %v223_v13, %v196_v5 }
  0x3b   : > { %v205_v11 = vcombine.high %v197_v8, %v197_v8  ;;  %v212_v12 = vsel %vm211_vm0, %v197_v8, 0.0  ;;  %v206_v15 = vcombine.high %v204_v10, %v204_v10  ;;  %v215_v17 = vsel %vm211_vm0, %v204_v10, 0.0 }
  0x3c   : > { %v238_v20 = vcombine.high %v230_v14, %v230_v14  ;;  %v244_v21 = vsel %vm211_vm0, %v230_v14, 0.0  ;;  %v239_v23 = vcombine.high %v237_v18, %v237_v18  ;;  %v247_v26 = vsel %vm211_vm0, %v237_v18, 0.0 }
  0x3d   : > { %v213_v16 = vsel %vm211_vm0, %v205_v11, 0.0  ;;  %v217_v22 = vsel %vm211_vm0, %v206_v15, 0.0 }
  0x3e   : > { %v214_v19 = vadd.f32 %v213_v16, %v212_v12  ;;  %v245_v25 = vsel %vm211_vm0, %v238_v20, 0.0  ;;  %v249_v29 = vsel %vm211_vm0, %v239_v23, 0.0 }
  0x3f   : > { %v246_v27 = vadd.f32 %v245_v25, %v244_v21 }
  0x40   : > { %v216_v24 = vadd.f32 %v215_v17, %v214_v19 }
  0x41   : > { %v248_v30 = vadd.f32 %v247_v26, %v246_v27 }
  0x42   : > { %v218_v28 = vadd.f32 %v217_v22, %v216_v24 }
  0x43   : > { %v250_v31 = vadd.f32 %v249_v29, %v248_v30 }
  0x44   : > { %219 = vadd.xlane.f32.xlu0 %v218_v28 }
  0x48   : > { %251 = vadd.xlane.f32.xlu0 %v250_v31 }
  0xd1   : > { %v220_v32 = vpop.xlane.xlu0 %219 }
  0xd2   : > { %258 = vst.msk [vmem:[%s183_s28] sm:$0x3] %vm257_vm1, %v220_v32 }
  0xd5   : > { %v252_v33 = vpop.xlane.xlu0 %251 }
  0xd6   : > { %259 = vst.msk [vmem:[%s187_s3] sm:$0x3] %vm257_vm1, %v252_v33 }
  0xd9   : > { %v274_v34 = vld [vmem:[%s183_s28] sm:$0x3] }
  0xda   : > { %v277_v35 = vmul.f32 0.001953125, %v274_v34 }
  0xdc   : > { %v278_v36 = vmul.f32 %v277_v35, %v274_v34  ;;  %291 = vst.msk [vmem:[%s183_s28] sm:$0x3] %vm257_vm1, %v277_v35 }
  0xdd   : > { %v275_v37 = vld [vmem:[%s187_s3] sm:$0x3] }
  0xde   : > { %v279_v38 = vsub.f32 %v275_v37, %v278_v36 }
  0xe0   : > { %v281_v39 = vmul.f32 0.0019569471, %v279_v38 }
  0xe2   : > { %v282_v40 = vmax.f32 %v281_v39, 0.0 }
  0xe4   : > { %474 = vrsqrt.f32 %v282_v40  ;;  %vm285_vm2 = vcmp.eq.f32.partialorder %v282_v40, inf  ;;  %v288_v43 = vand.u32 2147483648, %v282_v40  ;;  %vm287_vm3 = vcmp.eq.f32.partialorder %v282_v40, 0.0 }
  0xee   : > { %v475_v41 = vpop.eup %474 }
  0xef   : > { %v284_v42 = vmul.f32 %v475_v41, %v282_v40 }
  0xf1   : > { %v286_v44 = vsel %vm285_vm2, %v282_v40, %v284_v42 }
  0xf2   : > { %v289_v45 = vsel %vm287_vm3, %v288_v43, %v286_v44 }
  0xf3   : > { %v292_v46 = vadd.f32 1e-10, %v289_v45 }
  0xf5   : > { %476 = vrcp.f32 %v292_v46 }
  0xff   : > { %v477_v47 = vpop.eup %476 }
 0x100   : > { %295 = vst.msk [vmem:[%s187_s3] sm:$0x3] %vm257_vm1, %v477_v47 }
 0x101 PF: > { %s16_s14 = sadd.s32 1, %s558_s14   ;;  %s725_s9 = smov %s542_s10 }
 0x102   : > { %p13_p9 = scmp.ge.s32.totalorder %s16_s14, 4   ;;  %s726_s10 = smov %s546_s11 }
 0x103   : > { %s727_s11 = smov %s626_s21  ;;  %s728_s12 = smov %s554_s13 }
 0x104   : > { %s729_s13 = smov %s731_s16  ;;  %15 = sbr.rel (!%p13_p9) target bundleno = 4 (0x4), region = 88 }
 0x10b   :  { %329 = vsyncpa [#allocation3], 1 }
 0x10c   :  { %331 = vsyncpa [#allocation3 + $0x1], 1 }

</bundles_post_ra>
